<compile_context>
chip_gen: v7x
topology: tpu7x:2x2x1
jax: 0.10.0
libtpu: 0.0.40
codegen_flags: <defaults>
</compile_context>

<pallas_src>
import functools

import jax
import jax.numpy as jnp
from jax.experimental import pallas as pl
from jax.experimental.pallas import tpu as pltpu


def _round_up(x, m):
    return ((x + m - 1) // m) * m


def _leaky_relu_resnet_kernel(num_hidden, negative_slope, mm_dtype,
                              x_ref, *refs):
    """Feature-major (batch-on-lanes) forward.

    x_ref:  (f_in, TM)            -- batch on the lane axis
    refs:   w0, b0, ..., w_{H-1}, b_{H-1}, w_last, out_ref
      w_i:    (out_i, in_i)        -- PyTorch nn.Linear layout, MXU-stationary
      b_i:    (out_i, 1)
      w_last: (how_fat, 1)
      out:    (1, TM)              -- lane-dense output row
    """
    out_ref = refs[-1]
    params = refs[:-1]

    h = x_ref[...].astype(jnp.float32)                        # (f_in, TM)
    for i in range(num_hidden):
        w = params[2 * i][...]                                # (out, in) resident
        b = params[2 * i + 1][...]                            # (out, 1)  resident
        prev = h
        # MXU: small stationary weight, batch fills the lane/N dimension.
        z = jnp.dot(w, h.astype(mm_dtype),
                    preferred_element_type=jnp.float32) + b   # f32 accumulate
        h = jnp.where(z >= 0, z, negative_slope * z)          # LeakyReLU (VPU, f32)
        if i > 0:
            h = h + prev                                      # residual

    # Final width-1 layer (bias=False) fused with the module's trailing
    # sum(dim=1) (a no-op on width 1): broadcast-multiply + sublane reduce.
    w_last = params[2 * num_hidden][...]                      # (how_fat, 1) f32
    out_ref[...] = jnp.sum(w_last * h, axis=0, keepdims=True)  # (1, TM)


def leaky_relu_resnet_forward(x, weights, hidden_biases, negative_slope=0.1,
                              tile_m=1024, matmul_dtype=jnp.float32):
    """Forward pass of LeakyReLUResNet.

    x:             (B, input_length) float32
    weights[i]:    (out_i, in_i)  -- PyTorch nn.Linear layout
    hidden_biases: length num_layers-1; hidden_biases[i] has shape (out_i,)
                   (the last Linear has bias=False in the PyTorch module)
    matmul_dtype:  jnp.float32, or jnp.bfloat16 for the v6e/v7x MXU fast path
                   (accumulation and all elementwise math stay f32).
    """
    num_layers = len(weights)
    num_hidden = num_layers - 1
    assert len(hidden_biases) == num_hidden
    # The residual x + prevx at layers 1..num_layers-2 needs matching widths.
    for i in range(1, num_hidden):
        assert weights[i].shape[0] == weights[i].shape[1], (
            "residual `x = x + prevx` requires square hidden layers")
    assert weights[-1].shape[0] == 1, "last layer must have output width 1"

    x = x.astype(jnp.float32)
    B, f_in = x.shape

    # Batch lives on the lane axis -> tiles must be multiples of 128.
    assert tile_m % 128 == 0
    b_al = _round_up(B, 128)
    if b_al <= tile_m:
        tm, b_pad = b_al, b_al                 # single exact tile at small B
    else:
        tm, b_pad = tile_m, _round_up(B, tile_m)

    # Transpose once in the wrapper: (f_in, B) feature-major, batch on lanes.
    x_t = x.T
    if b_pad != B:
        x_t = jnp.pad(x_t, ((0, 0), (0, b_pad - B)))
    grid = (b_pad // tm,)

    inputs = [x_t]
    in_specs = [pl.BlockSpec((f_in, tm), lambda i: (0, i))]
    for w, b in zip(weights[:num_hidden], hidden_biases):
        w = w.astype(matmul_dtype)                         # bf16 on v6e/v7x
        b2 = b.astype(jnp.float32).reshape(-1, 1)          # (out, 1)
        inputs += [w, b2]
        in_specs += [pl.BlockSpec(w.shape, lambda i: (0, 0)),   # VMEM-resident
                     pl.BlockSpec(b2.shape, lambda i: (0, 0))]  # VMEM-resident
    w_last = weights[-1].astype(jnp.float32).reshape(-1, 1)     # (how_fat, 1)
    inputs.append(w_last)
    in_specs.append(pl.BlockSpec(w_last.shape, lambda i: (0, 0)))

    out = pl.pallas_call(
        functools.partial(_leaky_relu_resnet_kernel, num_hidden,
                          float(negative_slope), matmul_dtype),
        out_shape=jax.ShapeDtypeStruct((grid[0], tm), jnp.float32),
        grid=grid,
        in_specs=in_specs,
        out_specs=pl.BlockSpec((1, tm), lambda i: (i, 0)),   # lane-dense store
        compiler_params=pltpu.CompilerParams(
            dimension_semantics=("parallel",)),  # batch tiles shard across TCs (v7x)
    )(*inputs)
    return out.reshape(b_pad)[:B]   # matches torch.sum(x, axis=1) -> shape (B,)


def init_params(key, input_length, num_layers, how_fat):
    """nn.Linear-style init; weights in PyTorch layout (out, in); the last
    layer has no bias (bias=(i != num_layers-1) in the PyTorch module)."""
    widths = [input_length] + [how_fat] * (num_layers - 1) + [1]
    weights, hidden_biases = [], []
    for i in range(num_layers):
        fan_in, fan_out = widths[i], widths[i + 1]
        key, kw, kb = jax.random.split(key, 3)
        bound = 1.0 / jnp.sqrt(fan_in)
        weights.append(
            jax.random.uniform(kw, (fan_out, fan_in), jnp.float32, -bound, bound))
        if i != num_layers - 1:
            hidden_biases.append(
                jax.random.uniform(kb, (fan_out,), jnp.float32, -bound, bound))
    return weights, hidden_biases


def reference_forward(x, weights, hidden_biases, negative_slope=0.1):
    """Pure-JAX reference matching the PyTorch module (PyTorch weight layout)."""
    num_layers = len(weights)
    h = x
    for i in range(num_layers):
        prev = h
        h = h @ weights[i].T
        if i < num_layers - 1:
            h = h + hidden_biases[i]
            h = jnp.where(h >= 0, h, negative_slope * h)
            if i > 0:
                h = h + prev
    return jnp.sum(h, axis=1)


if __name__ == "__main__":
    input_length = 32
    how_fat = 32
    num_layers = 4
    negative_slope = 0.1

    key = jax.random.PRNGKey(0)
    key, kx = jax.random.split(key)
    weights, hidden_biases = init_params(key, input_length, num_layers, how_fat)

    # (1) f32 matmuls; B=384 is a single exact 384-lane tile (no padding waste).
    batch = 384
    x = jax.random.normal(kx, (batch, input_length), jnp.float32)
    out = jax.block_until_ready(
        leaky_relu_resnet_forward(x, weights, hidden_biases, negative_slope))
    ref = reference_forward(x, weights, hidden_biases, negative_slope)
    assert out.shape == (batch,)
    assert jnp.allclose(out, ref, atol=1e-4, rtol=1e-4), (
        float(jnp.max(jnp.abs(out - ref))))

    # (2) bf16 MXU inputs (v6e/v7x fast path; f32 accumulate + f32 elementwise)
    #     with a batch that exercises lane padding (300 -> 384).
    batch2 = 300
    key, kx2 = jax.random.split(key)
    x2 = jax.random.normal(kx2, (batch2, input_length), jnp.float32)
    out2 = jax.block_until_ready(
        leaky_relu_resnet_forward(x2, weights, hidden_biases, negative_slope,
                                  matmul_dtype=jnp.bfloat16))
    ref2 = reference_forward(x2, weights, hidden_biases, negative_slope)
    assert out2.shape == (batch2,)
    assert jnp.allclose(out2, ref2, atol=5e-2, rtol=5e-2), (
        float(jnp.max(jnp.abs(out2 - ref2))))

    print("KERNEL_OK")
</pallas_src>

<mosaic_0001>
module attributes {stable_mosaic.version = 11 : i64} {
  func.func @_leaky_relu_resnet_kernel(%arg0: i32, %arg1: memref<32x384xf32, #tpu.memory_space<vmem>>, %arg2: memref<32x32xf32, #tpu.memory_space<vmem>>, %arg3: memref<32x1xf32, #tpu.memory_space<vmem>>, %arg4: memref<32x32xf32, #tpu.memory_space<vmem>>, %arg5: memref<32x1xf32, #tpu.memory_space<vmem>>, %arg6: memref<32x32xf32, #tpu.memory_space<vmem>>, %arg7: memref<32x1xf32, #tpu.memory_space<vmem>>, %arg8: memref<32x1xf32, #tpu.memory_space<vmem>>, %arg9: memref<1x384xf32, #tpu.memory_space<vmem>>) attributes {dimension_semantics = [#tpu.dimension_semantics<parallel>], iteration_bounds = array<i64: 1>, scalar_prefetch = 0 : i64, scratch_operands = 0 : i64, tpu.core_type = #tpu.core_type<tc>, window_params = [{transform_indices = @transform_0, window_bounds = array<i64: 32, 384>}, {pipeline_mode = #tpu.pipeline_mode<synchronous>, transform_indices = @transform_1, window_bounds = array<i64: 32, 32>}, {pipeline_mode = #tpu.pipeline_mode<synchronous>, transform_indices = @transform_2, window_bounds = array<i64: 32, 1>}, {pipeline_mode = #tpu.pipeline_mode<synchronous>, transform_indices = @transform_3, window_bounds = array<i64: 32, 32>}, {pipeline_mode = #tpu.pipeline_mode<synchronous>, transform_indices = @transform_4, window_bounds = array<i64: 32, 1>}, {pipeline_mode = #tpu.pipeline_mode<synchronous>, transform_indices = @transform_5, window_bounds = array<i64: 32, 32>}, {pipeline_mode = #tpu.pipeline_mode<synchronous>, transform_indices = @transform_6, window_bounds = array<i64: 32, 1>}, {pipeline_mode = #tpu.pipeline_mode<synchronous>, transform_indices = @transform_7, window_bounds = array<i64: 32, 1>}, {transform_indices = @transform_8, window_bounds = array<i64: 1, 384>}]} {
    %c0 = arith.constant 0 : index
    %c0_0 = arith.constant 0 : index
    %0 = vector.load %arg1[%c0, %c0_0] : memref<32x384xf32, #tpu.memory_space<vmem>>, vector<32x384xf32>
    %c0_1 = arith.constant 0 : index
    %c0_2 = arith.constant 0 : index
    %1 = vector.load %arg2[%c0_1, %c0_2] : memref<32x32xf32, #tpu.memory_space<vmem>>, vector<32x32xf32>
    %c0_3 = arith.constant 0 : index
    %c0_4 = arith.constant 0 : index
    %2 = vector.load %arg3[%c0_3, %c0_4] : memref<32x1xf32, #tpu.memory_space<vmem>>, vector<32x1xf32>
    %cst = arith.constant dense<0.000000e+00> : vector<32x384xf32>
    %3 = tpu.matmul %1, %0, %cst {dimension_numbers = #tpu.dot_dimension_numbers<[1], [0], [0], [1], [0, 0, 1, 1], [], []>} : vector<32x32xf32>, vector<32x384xf32>, vector<32x384xf32> -> vector<32x384xf32>
    %4 = vector.broadcast %2 : vector<32x1xf32> to vector<32x384xf32>
    %5 = arith.addf %3, %4 : vector<32x384xf32>
    %cst_5 = arith.constant 0.000000e+00 : f32
    %6 = vector.broadcast %cst_5 : f32 to vector<32x384xf32>
    %7 = arith.cmpf oge, %5, %6 : vector<32x384xf32>
    %cst_6 = arith.constant 1.000000e-01 : f32
    %8 = vector.broadcast %cst_6 : f32 to vector<32x384xf32>
    %9 = arith.mulf %8, %5 : vector<32x384xf32>
    %10 = arith.select %7, %5, %9 : vector<32x384xi1>, vector<32x384xf32>
    %c0_7 = arith.constant 0 : index
    %c0_8 = arith.constant 0 : index
    %11 = vector.load %arg4[%c0_7, %c0_8] : memref<32x32xf32, #tpu.memory_space<vmem>>, vector<32x32xf32>
    %c0_9 = arith.constant 0 : index
    %c0_10 = arith.constant 0 : index
    %12 = vector.load %arg5[%c0_9, %c0_10] : memref<32x1xf32, #tpu.memory_space<vmem>>, vector<32x1xf32>
    %cst_11 = arith.constant dense<0.000000e+00> : vector<32x384xf32>
    %13 = tpu.matmul %11, %10, %cst_11 {dimension_numbers = #tpu.dot_dimension_numbers<[1], [0], [0], [1], [0, 0, 1, 1], [], []>} : vector<32x32xf32>, vector<32x384xf32>, vector<32x384xf32> -> vector<32x384xf32>
    %14 = vector.broadcast %12 : vector<32x1xf32> to vector<32x384xf32>
    %15 = arith.addf %13, %14 : vector<32x384xf32>
    %cst_12 = arith.constant 0.000000e+00 : f32
    %16 = vector.broadcast %cst_12 : f32 to vector<32x384xf32>
    %17 = arith.cmpf oge, %15, %16 : vector<32x384xf32>
    %cst_13 = arith.constant 1.000000e-01 : f32
    %18 = vector.broadcast %cst_13 : f32 to vector<32x384xf32>
    %19 = arith.mulf %18, %15 : vector<32x384xf32>
    %20 = arith.select %17, %15, %19 : vector<32x384xi1>, vector<32x384xf32>
    %21 = arith.addf %20, %10 : vector<32x384xf32>
    %c0_14 = arith.constant 0 : index
    %c0_15 = arith.constant 0 : index
    %22 = vector.load %arg6[%c0_14, %c0_15] : memref<32x32xf32, #tpu.memory_space<vmem>>, vector<32x32xf32>
    %c0_16 = arith.constant 0 : index
    %c0_17 = arith.constant 0 : index
    %23 = vector.load %arg7[%c0_16, %c0_17] : memref<32x1xf32, #tpu.memory_space<vmem>>, vector<32x1xf32>
    %cst_18 = arith.constant dense<0.000000e+00> : vector<32x384xf32>
    %24 = tpu.matmul %22, %21, %cst_18 {dimension_numbers = #tpu.dot_dimension_numbers<[1], [0], [0], [1], [0, 0, 1, 1], [], []>} : vector<32x32xf32>, vector<32x384xf32>, vector<32x384xf32> -> vector<32x384xf32>
    %25 = vector.broadcast %23 : vector<32x1xf32> to vector<32x384xf32>
    %26 = arith.addf %24, %25 : vector<32x384xf32>
    %cst_19 = arith.constant 0.000000e+00 : f32
    %27 = vector.broadcast %cst_19 : f32 to vector<32x384xf32>
    %28 = arith.cmpf oge, %26, %27 : vector<32x384xf32>
    %cst_20 = arith.constant 1.000000e-01 : f32
    %29 = vector.broadcast %cst_20 : f32 to vector<32x384xf32>
    %30 = arith.mulf %29, %26 : vector<32x384xf32>
    %31 = arith.select %28, %26, %30 : vector<32x384xi1>, vector<32x384xf32>
    %32 = arith.addf %31, %21 : vector<32x384xf32>
    %c0_21 = arith.constant 0 : index
    %c0_22 = arith.constant 0 : index
    %33 = vector.load %arg8[%c0_21, %c0_22] : memref<32x1xf32, #tpu.memory_space<vmem>>, vector<32x1xf32>
    %34 = vector.broadcast %33 : vector<32x1xf32> to vector<32x384xf32>
    %35 = arith.mulf %34, %32 : vector<32x384xf32>
    %cst_23 = arith.constant dense<0.000000e+00> : vector<384xf32>
    %36 = vector.multi_reduction <add>, %35, %cst_23 [0] : vector<32x384xf32> to vector<384xf32>
    %37 = vector.shape_cast %36 : vector<384xf32> to vector<1x384xf32>
    %c0_24 = arith.constant 0 : index
    %c0_25 = arith.constant 0 : index
    %38 = vector.load %arg9[%c0_24, %c0_25] : memref<1x384xf32, #tpu.memory_space<vmem>>, vector<1x384xf32>
    tpu.vector_store %arg9[%c0_24, %c0_25], %37 {strides = array<i32>} : memref<1x384xf32, #tpu.memory_space<vmem>>, vector<1x384xf32>,
    return
  }
  func.func @transform_0(%arg0: i32) -> (i32, i32) {
    %c0_i32 = arith.constant 0 : i32
    %c0_i32_0 = arith.constant 0 : i32
    return %c0_i32, %arg0 : i32, i32
  }
  func.func @transform_1(%arg0: i32) -> (i32, i32) {
    %c0_i32 = arith.constant 0 : i32
    %c0_i32_0 = arith.constant 0 : i32
    %c0_i32_1 = arith.constant 0 : i32
    return %c0_i32, %c0_i32_0 : i32, i32
  }
  func.func @transform_2(%arg0: i32) -> (i32, i32) {
    %c0_i32 = arith.constant 0 : i32
    %c0_i32_0 = arith.constant 0 : i32
    %c0_i32_1 = arith.constant 0 : i32
    return %c0_i32, %c0_i32_0 : i32, i32
  }
  func.func @transform_3(%arg0: i32) -> (i32, i32) {
    %c0_i32 = arith.constant 0 : i32
    %c0_i32_0 = arith.constant 0 : i32
    %c0_i32_1 = arith.constant 0 : i32
    return %c0_i32, %c0_i32_0 : i32, i32
  }
  func.func @transform_4(%arg0: i32) -> (i32, i32) {
    %c0_i32 = arith.constant 0 : i32
    %c0_i32_0 = arith.constant 0 : i32
    %c0_i32_1 = arith.constant 0 : i32
    return %c0_i32, %c0_i32_0 : i32, i32
  }
  func.func @transform_5(%arg0: i32) -> (i32, i32) {
    %c0_i32 = arith.constant 0 : i32
    %c0_i32_0 = arith.constant 0 : i32
    %c0_i32_1 = arith.constant 0 : i32
    return %c0_i32, %c0_i32_0 : i32, i32
  }
  func.func @transform_6(%arg0: i32) -> (i32, i32) {
    %c0_i32 = arith.constant 0 : i32
    %c0_i32_0 = arith.constant 0 : i32
    %c0_i32_1 = arith.constant 0 : i32
    return %c0_i32, %c0_i32_0 : i32, i32
  }
  func.func @transform_7(%arg0: i32) -> (i32, i32) {
    %c0_i32 = arith.constant 0 : i32
    %c0_i32_0 = arith.constant 0 : i32
    %c0_i32_1 = arith.constant 0 : i32
    return %c0_i32, %c0_i32_0 : i32, i32
  }
  func.func @transform_8(%arg0: i32) -> (i32, i32) {
    %c0_i32 = arith.constant 0 : i32
    %c0_i32_0 = arith.constant 0 : i32
    return %arg0, %c0_i32 : i32, i32
  }
}

</mosaic_0001>

<bundles_post_ra>
// kernel: tpu_custom_call.1
= control target key start
LH: loop header
LB: loop body
LE: loop exit
PB: predicated region body
PF: predicated region fallthrough
CT: control target
= control target key end

     0   :  { %13 = vsyncpa [#allocation3], 0  ;;  %s1524_s0 = inlined_call_operand.vmem [shape: f32[32,384], index: 0, kind: input, shape index: {}]   ;;  %s1525_s1 = inlined_call_operand.vmem [shape: f32[32,32], index: 1, kind: input, shape index: {}]   ;;  %s1526_s2 = inlined_call_operand.vmem [shape: f32[32,1], index: 2, kind: input, shape index: {}]   ;;  %s1527_s3 = inlined_call_operand.hbm [shape: f32[32,32], index: 3, kind: input, shape index: {}]   ;;  %s1528_s4 = inlined_call_operand.vmem [shape: f32[32,1], index: 4, kind: input, shape index: {}]   ;;  %s1529_s5 = inlined_call_operand.hbm [shape: f32[32,32], index: 5, kind: input, shape index: {}]   ;;  %s1530_s6 = inlined_call_operand.vmem [shape: f32[32,1], index: 6, kind: input, shape index: {}]   ;;  %s1531_s7 = inlined_call_operand.vmem [shape: f32[32,1], index: 7, kind: input, shape index: {}]   ;;  %s1532_s8 = inlined_call_operand.hbm [shape: f32[1,384], index: 8, kind: output, shape index: {}]  }
   0x1   :  { %14 = vsyncpa [#allocation6], 0 }
   0x2   :  { %15 = vsyncpa [#allocation4], 0  ;;  %s1176_s27 = smov [#allocation2]   ;;  %s1104_s9 = scalar_lea.hbm %s1527_s3, 512 }
   0x3   :  { %s27_s28 = sshll.u32 %s1176_s27, 4  ;;  %p1105_p0 = scmp.ne.s32.totalorder %s1527_s3, %s1104_s9  ;;  %s28_s28 = int_to_ptr.vmem [resolvable:$true] %s27_s28 }
   0x4   :  { %p1108_p1 = scmp.lt.u32.totalorder %s1104_s9, %s1527_s3 }
   0x6   :  { %p1110_p2 = pnand %p1108_p1, %p1105_p0 }
   0x8   :  { %1113 = shalt.err (!%p1110_p2)
}
   0x9   :  { %s1114_s14 = scalar_lea.vmem %s28_s28, 512  ;;  %p1119_p4 = scmp.lt.s32.totalorder %s28_s28, %s28_s28 }
   0xa   :  { %p1115_p3 = scmp.ne.s32.totalorder %s28_s28, %s1114_s14  ;;  %p1120_p5 = scmp.lt.s32.totalorder %s1114_s14, %s1114_s14 }
   0xc   :  { %p1121_p6 = por %p1120_p5, %p1119_p4 }
   0xe   :  { %p1122_p7 = pnand %p1121_p6, %p1115_p3 }
  0x10   :  { %1125 = shalt.err (!%p1122_p7)
}
  0x11   :  { %s1177_s15 = smov 128   ;;  %s1178_s16 = smov 8  }
  0x12   :  { %33 = dma.hbm_to_vmem [thread:$0]  %s1527_s3, 512, %s28_s28, [#allocation3], %s1177_s15, %s1177_s15, %s1178_s16  }
  0x13   :  { %s1179_s19 = smov [#allocation5]   ;;  %s1126_s23 = scalar_lea.hbm %s1529_s5, 512 }
  0x14   :  { %s41_s20 = sshll.u32 %s1179_s19, 4  ;;  %p1127_p8 = scmp.ne.s32.totalorder %s1529_s5, %s1126_s23  ;;  %s42_s20 = int_to_ptr.vmem [resolvable:$true] %s41_s20 }
  0x15   :  { %p1130_p9 = scmp.lt.u32.totalorder %s1126_s23, %s1529_s5 }
  0x17   :  { %p1132_p10 = pnand %p1130_p9, %p1127_p8 }
  0x19   :  { %1135 = shalt.err (!%p1132_p10)
}
  0x1a   :  { %s1136_s29 = scalar_lea.vmem %s42_s20, 512  ;;  %p1141_p12 = scmp.lt.s32.totalorder %s42_s20, %s42_s20 }
  0x1b   :  { %p1137_p11 = scmp.ne.s32.totalorder %s42_s20, %s1136_s29  ;;  %p1142_p13 = scmp.lt.s32.totalorder %s1136_s29, %s1136_s29 }
  0x1d   :  { %p1143_p0 = por %p1142_p13, %p1141_p12 }
  0x1f   :  { %p1144_p1 = pnand %p1143_p0, %p1137_p11 }
  0x21   :  { %1147 = shalt.err (!%p1144_p1)
}
  0x22   :  { %47 = dma.hbm_to_vmem [thread:$0]  %s1529_s5, 512, %s42_s20, [#allocation6], %s1177_s15, %s1177_s15, %s1178_s16  }
  0x23   :  { %1170 = dma.done.wait [#allocation3], 512  }
  0x24   :  { %1171 = vsyncadd [#allocation3], 4294966784 }
  0x25   :  { %1172 = dma.done.wait [#allocation6], 512  }
  0x26   :  { %1173 = vsyncadd [#allocation6], 4294966784  ;;  %v1180_v0 = vmov 0.0   ;;  %v1181_v1 = vmov 0   ;;  %v59_v2 = vld [vmem:[%s1524_s0 + $0x8] sm:$0xff]  ;;  %v62_v3 = vld [vmem:[%s1524_s0 + $0x20] sm:$0xff] }
  0x27   :  { %175 = vmatprep.mubr.f32.mxu0 %v1180_v0  ;;  %1102 = vset.pattern.permute.xlu0 %v1181_v1  ;;  %v60_v4 = vld [vmem:[%s1524_s0 + $0x10] sm:$0xff]  ;;  %v1046_v5 = vpack.c.bf16 %v62_v3, %v59_v2  ;;  %v63_v6 = vld [vmem:[%s1524_s0 + $0x28] sm:$0xff]  ;;  %v58_v7 = vld [vmem:[%s1524_s0] sm:$0xff]  ;;  %vm98_vm0 = vcmask 261120  }
  0x28   :  { %1103 = vset.pattern.permute.xlu1 %v1181_v1  ;;  %v61_v8 = vld [vmem:[%s1524_s0 + $0x18] sm:$0xff]  ;;  %v1054_v9 = vpack.c.bf16 %v63_v6, %v60_v4  ;;  %v68_v12 = vld [vmem:[%s1524_s0 + $0x50] sm:$0xff]  ;;  %v66_v13 = vld [vmem:[%s1524_s0 + $0x40] sm:$0xff] }
  0x29   :  { %v1048_v10 = vpack.c.bf16 %v61_v8, %v58_v7  ;;  %v65_v11 = vld [vmem:[%s1524_s0 + $0x38] sm:$0xff]  ;;  %1047 = vmatprep.subr.bf16.mxu0 %v1046_v5  ;;  %v64_v16 = vld [vmem:[%s1524_s0 + $0x30] sm:$0xff]  ;;  %v67_v17 = vld [vmem:[%s1524_s0 + $0x48] sm:$0xff] }
  0x2a   :  { %v1050_v14 = vpack.c.bf16 %v68_v12, %v65_v11  ;;  %v69_v15 = vld [vmem:[%s1524_s0 + $0x58] sm:$0xff]  ;;  %1055 = vmatprep.subr.bf16.mxu1 %v1054_v9  ;;  %v1052_v19 = vpack.c.bf16 %v67_v17, %v64_v16  ;;  %v70_v20 = vld [vmem:[%s1525_s1] sm:$0xff]  ;;  %v76_v22 = vld [vmem:[%s1526_s2 + $0x10] sm:$0xff] }
  0x2b   :  { %1049 = vmatpush1.bf16.msra.mxu0 %v1048_v10  ;;  %v1058_v18 = vpack.c.bf16 %v69_v15, %v66_v13  ;;  %1057 = vmatpush3.bf16.msra.mxu1 %v1054_v9  ;;  %v74_v21 = vld [vmem:[%s1526_s2] sm:$0xff]  ;;  %v75_v23 = vld [vmem:[%s1526_s2 + $0x8] sm:$0xff]  ;;  %v72_v25 = vld [vmem:[%s1525_s1 + $0x10] sm:$0xff] }
  0x2c   :  { %1051 = vmatprep.subr.bf16.mxu0 %v1050_v14  ;;  %1012 = vmatprep.mubr.msk.f32.mxu1 %vm98_vm0, %v70_v20  ;;  %v71_v24 = vld [vmem:[%s1525_s1 + $0x8] sm:$0xff]  ;;  %v77_v26 = vld [vmem:[%s1526_s2 + $0x18] sm:$0xff]  ;;  %v325_v27 = vld [vmem:[%s1528_s4] sm:$0xff] }
  0x2d   :  { %1059 = vmatprep.subr.bf16.mxu1 %v1058_v18  ;;  %80 = vperm.xlu0 %1102, %v74_v21   ;;  %v73_v28 = vld [vmem:[%s1525_s1 + $0x18] sm:$0xff]  ;;  %v326_v29 = vld [vmem:[%s1528_s4 + $0x8] sm:$0xff]  ;;  %v327_v30 = vld [vmem:[%s1528_s4 + $0x10] sm:$0xff] }
  0x2e   :  { %90 = vperm.xlu1 %1103, %v76_v22   ;;  %v328_v31 = vld [vmem:[%s1528_s4 + $0x18] sm:$0xff]  ;;  %v587_v32 = vld [vmem:[%s1530_s6] sm:$0xff]  ;;  %v588_v33 = vld [vmem:[%s1530_s6 + $0x8] sm:$0xff] }
  0x2f   :  { %1053 = vmatpush1.bf16.msra.mxu0 %v1052_v19  ;;  %1061 = vmatpush3.bf16.msra.mxu1 %v1058_v18  ;;  %v589_v34 = vld [vmem:[%s1530_s6 + $0x10] sm:$0xff]  ;;  %v590_v35 = vld [vmem:[%s1530_s6 + $0x18] sm:$0xff]  ;;  %v845_v36 = vld [vmem:[%s1531_s7] sm:$0xff]  ;;  %s1183_s6 = smov [#allocation7]  }
  0x30   :  { %v846_v37 = vld [vmem:[%s1531_s7 + $0x8] sm:$0xff]  ;;  %v847_v38 = vld [vmem:[%s1531_s7 + $0x10] sm:$0xff]  ;;  %v848_v39 = vld [vmem:[%s1531_s7 + $0x18] sm:$0xff]  ;;  %s946_s7 = sshll.u32 %s1183_s6, 4  ;;  %s947_s7 = int_to_ptr.vmem [resolvable:$true] %s946_s7 }
  0x31   :  { %85 = vperm.xlu0 %1102, %v75_v23   ;;  %v1362_v40 = vld [vmem:[#allocation2] sm:$0xff]  ;;  %s1148_s18 = scalar_lea.vmem %s947_s7, 48  ;;  %s1152_s19 = scalar_lea.vmem %s947_s7, 64 }
  0x32   :  { %956 = vmatmul.mubr.msk.f32.vlgmr.msra.gmra.mrb[0].mxu0 %vm98_vm0, %v70_v20  ;;  %1013 = vmatmul.mubr.msk.f32.vlgmr.msra.gmra.mrb[0].mxu1 %vm98_vm0, %v71_v24  ;;  %p1149_p2 = scmp.ne.s32.totalorder %s947_s7, %s1148_s18  ;;  %p1153_p3 = scmp.lt.s32.totalorder %s947_s7, %s947_s7 }
  0x33   :  { %181 = vmatprep.mubr.f32.mxu0 %v1180_v0  ;;  %1015 = vmatprep.mubr.msk.f32.mxu1 %vm98_vm0, %v72_v25  ;;  %p1154_p4 = scmp.lt.s32.totalorder %s1152_s19, %s1148_s18 }
  0x34   :  { %95 = vperm.xlu1 %1103, %v77_v26  }
  0x35   :  { %331 = vperm.xlu0 %1102, %v325_v27   ;;  %p1155_p5 = por %p1154_p4, %p1153_p3 }
  0x36   :  { %957 = vmatmul.mubr.msk.f32.gmra.mrb[2].mxu0 %vm98_vm0, %v71_v24  ;;  %1016 = vmatmul.mubr.msk.f32.gmra.mrb[2].mxu1 %vm98_vm0, %v73_v28 }
  0x37   :  { %187 = vmatprep.mubr.f32.mxu0 %v1180_v0  ;;  %425 = vmatprep.mubr.f32.mxu1 %v1180_v0  ;;  %p1156_p6 = pnand %p1155_p5, %p1149_p2 }
  0x38   :  { %336 = vperm.xlu1 %1103, %v326_v29  }
  0x39   :  { %341 = vperm.xlu0 %1102, %v327_v30  }
  0x3a   :  { %958 = vmatmul.mubr.msk.f32.gmra.mrb[4].mxu0 %vm98_vm0, %v72_v25 }
  0x3b   :  { %193 = vmatprep.mubr.f32.mxu0 %v1180_v0 }
  0x3c   :  { %346 = vperm.xlu1 %1103, %v328_v31   ;;  %v322_v31 = vld [vmem:[#allocation2 + $0x8] sm:$0xff] }
  0x3d   :  { %593 = vperm.xlu0 %1102, %v587_v32   ;;  %v323_v32 = vld [vmem:[#allocation2 + $0x10] sm:$0xff] }
  0x3e   :  { %959 = vmatmul.mubr.msk.f32.gmra.mrb[6].mxu0 %vm98_vm0, %v73_v28 }
  0x3f   :  { %1026 = vmatprep.mubr.msk.f32.mxu0 %vm98_vm0, %v1362_v40 }
  0x40   :  { %598 = vperm.xlu1 %1103, %v588_v33  }
  0x41   :  { %603 = vperm.xlu0 %1102, %v589_v34  }
  0x44   :  { %608 = vperm.xlu1 %1103, %v590_v35  }
  0x45   :  { %851 = vperm.xlu0 %1102, %v845_v36  }
  0x48   :  { %856 = vperm.xlu1 %1103, %v846_v37  }
  0x49   :  { %861 = vperm.xlu0 %1102, %v847_v38   ;;  %v324_v38 = vld [vmem:[#allocation2 + $0x18] sm:$0xff] }
  0x4c   :  { %866 = vperm.xlu1 %1103, %v848_v39   ;;  %v1417_v39 = vld [vmem:[#allocation5] sm:$0xff] }
  0xac   :  { %v81_v41 = vpop.permute.xlu0 %80 }
  0xad   :  { %v91_v42 = vpop.permute.xlu1 %90 }
  0xb0   :  { %v86_v43 = vpop.permute.xlu0 %85 }
  0xb3   :  { %v96_v52 = vpop.permute.xlu1 %95 }
 0x105   :  { %v177_v44 = vpop.f32.mrb[0].mxu0  ;;  %v1014_v46 = vpop.f32.mrb[0].mxu1 }
 0x106   :  { %v178_v45 = vadd.f32 %v177_v44, %v81_v41  ;;  %v179_v47 = vpop.f32.mrb[1].mxu0  ;;  %v272_v48 = vadd.f32 %v1014_v46, %v86_v43  ;;  %v266_v50 = vpop.f32.mrb[1].mxu1 }
 0x107   :  { %v180_v49 = vadd.f32 %v179_v47, %v81_v41  ;;  %v267_v51 = vadd.f32 %v266_v50, %v81_v41  ;;  %v337_v41 = vpop.permute.xlu1 %336 }
 0x108   :  { %v297_v53 = vmul.f32 0.1, %v178_v45  ;;  %vm290_vm1 = vcmp.ge.f32.partialorder %v272_v48, 0.0  ;;  %v302_v54 = vmul.f32 0.1, %v272_v48  ;;  %vm285_vm2 = vcmp.ge.f32.partialorder %v178_v45, 0.0 }
 0x109   :  { %vm287_vm3 = vcmp.ge.f32.partialorder %v267_v51, 0.0  ;;  %v299_v55 = vmul.f32 0.1, %v267_v51  ;;  %v183_v56 = vpop.f32.mrb[2].mxu0  ;;  %v1017_v57 = vpop.f32.mrb[2].mxu1  ;;  %vm286_vm4 = vcmp.ge.f32.partialorder %v180_v49, 0.0 }
 0x10a   :  { %v298_v58 = vmul.f32 0.1, %v180_v49  ;;  %v184_v59 = vadd.f32 %v183_v56, %v86_v43  ;;  %v282_v60 = vadd.f32 %v1017_v57, %v96_v52  ;;  %v185_v61 = vpop.f32.mrb[3].mxu0  ;;  %v276_v62 = vpop.f32.mrb[3].mxu1  ;;  %v1369_v3 = vsel %vm290_vm1, %v272_v48, %v302_v54 }
 0x10b   :  { %v186_v63 = vadd.f32 %v185_v61, %v86_v43  ;;  %v277_v1 = vadd.f32 %v276_v62, %v91_v42  ;;  %v1366_v2 = vsel %vm287_vm3, %v267_v51, %v299_v55  ;;  %v1385_v17 = vsel %vm285_vm2, %v178_v45, %v297_v53  ;;  %v1421_v48 = vpop.permute.xlu1 %346 }
 0x10c   :  { %vm288_vm5 = vcmp.ge.f32.partialorder %v184_v59, 0.0  ;;  %v300_v4 = vmul.f32 0.1, %v184_v59  ;;  %vm296_vm6 = vcmp.ge.f32.partialorder %v282_v60, 0.0  ;;  %v308_v5 = vmul.f32 0.1, %v282_v60 }
 0x10d   :  { %vm289_vm7 = vcmp.ge.f32.partialorder %v186_v63, 0.0  ;;  %v301_v6 = vmul.f32 0.1, %v186_v63  ;;  %vm293_vm8 = vcmp.ge.f32.partialorder %v277_v1, 0.0  ;;  %v305_v7 = vmul.f32 0.1, %v277_v1 }
 0x10e   :  { %v1371_v8 = vsel %vm288_vm5, %v184_v59, %v300_v4  ;;  %v189_v9 = vpop.f32.mrb[4].mxu0  ;;  %v1070_v10 = vpack.c.bf16 %v1369_v3, %v1366_v2  ;;  %v1375_v11 = vsel %vm296_vm6, %v282_v60, %v308_v5  ;;  %v1378_v14 = vsel %vm286_vm4, %v180_v49, %v298_v58 }
 0x10f   :  { %v190_v12 = vadd.f32 %v189_v9, %v91_v42  ;;  %v191_v13 = vpop.f32.mrb[5].mxu0  ;;  %v1380_v15 = vsel %vm289_vm7, %v186_v63, %v301_v6  ;;  %v1382_v16 = vsel %vm293_vm8, %v277_v1, %v305_v7  ;;  %v1064_v22 = vpack.c.bf16 %v1371_v8, %v1385_v17 }
 0x110   :  { %v192_v18 = vadd.f32 %v191_v13, %v91_v42  ;;  %1071 = vmatprep.subr.bf16.mxu0 %v1070_v10  ;;  %v1062_v20 = vpack.c.bf16 %v1380_v15, %v1378_v14  ;;  %v1074_v21 = vpack.c.bf16 %v1375_v11, %v1382_v16 }
 0x111   :  { %v195_v19 = vpop.f32.mrb[6].mxu0  ;;  %1073 = vmatpush3.bf16.msra.mxu0 %v1070_v10  ;;  %v303_v27 = vmul.f32 0.1, %v190_v12  ;;  %vm291_vm11 = vcmp.ge.f32.partialorder %v190_v12, 0.0 }
 0x112   :  { %v196_v23 = vadd.f32 %v195_v19, %v96_v52  ;;  %v197_v24 = vpop.f32.mrb[7].mxu0  ;;  %v304_v25 = vmul.f32 0.1, %v192_v18  ;;  %1063 = vmatprep.subr.bf16.mxu1 %v1062_v20  ;;  %1075 = vmatprep.subr.bf16.mxu0 %v1074_v21  ;;  %vm292_vm9 = vcmp.ge.f32.partialorder %v192_v18, 0.0 }
 0x113   :  { %v198_v26 = vadd.f32 %v197_v24, %v96_v52  ;;  %1065 = vmatpush1.bf16.msra.mxu1 %v1064_v22  ;;  %v1399_v35 = vsel %vm291_vm11, %v190_v12, %v303_v27 }
 0x114   :  { %vm294_vm10 = vcmp.ge.f32.partialorder %v196_v23, 0.0  ;;  %v306_v28 = vmul.f32 0.1, %v196_v23  ;;  %v1395_v33 = vsel %vm292_vm9, %v192_v18, %v304_v25 }
 0x115   :  { %vm295_vm12 = vcmp.ge.f32.partialorder %v198_v26, 0.0  ;;  %v307_v29 = vmul.f32 0.1, %v198_v26  ;;  %1077 = vmatpush3.bf16.msra.mxu0 %v1074_v21 }
 0x116   :  { %v1393_v30 = vsel %vm294_vm10, %v196_v23, %v306_v28  ;;  %v584_v28 = vld [vmem:[#allocation5 + $0x8] sm:$0xff] }
 0x117   :  { %v1397_v34 = vsel %vm295_vm12, %v198_v26, %v307_v29  ;;  %v1068_v37 = vpack.c.bf16 %v1393_v30, %v1399_v35 }
 0x118   :  { %v1066_v36 = vpack.c.bf16 %v1397_v34, %v1395_v33  ;;  %1027 = vmatmul.mubr.msk.f32.vlgmr.msra.gmra.mrb[8].mxu0 %vm98_vm0, %v322_v31 }
 0x119   :  { %1029 = vmatprep.mubr.msk.f32.mxu0 %vm98_vm0, %v323_v32 }
 0x11a   :  { %1067 = vmatprep.subr.bf16.mxu1 %v1066_v36 }
 0x11b   :  { %1069 = vmatpush1.bf16.msra.mxu1 %v1068_v37 }
 0x11c   :  { %1030 = vmatmul.mubr.msk.f32.gmra.mrb[10].mxu0 %vm98_vm0, %v324_v38 }
 0x11d   :  { %687 = vmatprep.mubr.f32.mxu0 %v1180_v0 }
 0x11e   :  { %964 = vmatmul.mubr.msk.f32.vlgmr.msra.gmra.mrb[4].mxu1 %vm98_vm0, %v1362_v40  ;;  %v332_v40 = vpop.permute.xlu0 %331 }
 0x11f   :  { %431 = vmatprep.mubr.f32.mxu1 %v1180_v0 }
 0x122   :  { %965 = vmatmul.mubr.msk.f32.gmra.mrb[6].mxu1 %vm98_vm0, %v322_v31  ;;  %v342_v46 = vpop.permute.xlu0 %341 }
 0x123   :  { %437 = vmatprep.mubr.f32.mxu1 %v1180_v0 }
 0x126   :  { %966 = vmatmul.mubr.msk.f32.gmra.mrb[8].mxu1 %vm98_vm0, %v323_v32 }
 0x127   :  { %443 = vmatprep.mubr.f32.mxu1 %v1180_v0 }
 0x12a   :  { %967 = vmatmul.mubr.msk.f32.gmra.mrb[10].mxu1 %vm98_vm0, %v324_v38  ;;  %v585_v38 = vld [vmem:[#allocation5 + $0x10] sm:$0xff] }
 0x12b   :  { %1040 = vmatprep.mubr.msk.f32.mxu1 %vm98_vm0, %v1417_v39 }
 0x1eb   :  { %v1028_v42 = vpop.f32.mrb[8].mxu0 }
 0x1ec   :  { %v522_v43 = vadd.f32 %v1028_v42, %v337_v41  ;;  %v516_v44 = vpop.f32.mrb[9].mxu0 }
 0x1ed   :  { %v517_v45 = vadd.f32 %v516_v44, %v332_v40 }
 0x1ee   :  { %vm540_vm13 = vcmp.ge.f32.partialorder %v522_v43, 0.0  ;;  %v552_v47 = vmul.f32 0.1, %v522_v43 }
 0x1ef   :  { %vm537_vm14 = vcmp.ge.f32.partialorder %v517_v45, 0.0  ;;  %v549_v49 = vmul.f32 0.1, %v517_v45  ;;  %v1031_v50 = vpop.f32.mrb[10].mxu0 }
 0x1f0   :  { %v564_v51 = vsel %vm540_vm13, %v522_v43, %v552_v47  ;;  %v532_v52 = vadd.f32 %v1031_v50, %v1421_v48  ;;  %v526_v53 = vpop.f32.mrb[11].mxu0  ;;  %v586_v43 = vld [vmem:[#allocation5 + $0x18] sm:$0xff] }
 0x1f1   :  { %v427_v54 = vpop.f32.mrb[4].mxu1  ;;  %v561_v55 = vsel %vm537_vm14, %v517_v45, %v549_v49  ;;  %v527_v56 = vadd.f32 %v526_v53, %v342_v46  ;;  %v1425_v59 = vadd.f32 %v564_v51, %v1369_v3 }
 0x1f2   :  { %v428_v57 = vadd.f32 %v427_v54, %v332_v40  ;;  %v429_v58 = vpop.f32.mrb[5].mxu1  ;;  %vm546_vm15 = vcmp.ge.f32.partialorder %v532_v52, 0.0  ;;  %v558_v60 = vmul.f32 0.1, %v532_v52  ;;  %v1428_v62 = vadd.f32 %v561_v55, %v1366_v2 }
 0x1f3   :  { %v430_v61 = vadd.f32 %v429_v58, %v332_v40  ;;  %vm543_vm1 = vcmp.ge.f32.partialorder %v527_v56, 0.0  ;;  %v555_v63 = vmul.f32 0.1, %v527_v56 }
 0x1f4   :  { %v570_v1 = vsel %vm546_vm15, %v532_v52, %v558_v60  ;;  %v547_v4 = vmul.f32 0.1, %v428_v57  ;;  %v1086_v6 = vpack.c.bf16 %v1425_v59, %v1428_v62  ;;  %vm535_vm3 = vcmp.ge.f32.partialorder %v428_v57, 0.0 }
 0x1f5   :  { %v548_v5 = vmul.f32 0.1, %v430_v61  ;;  %v433_v7 = vpop.f32.mrb[6].mxu1  ;;  %v567_v9 = vsel %vm543_vm1, %v527_v56, %v555_v63  ;;  %vm536_vm2 = vcmp.ge.f32.partialorder %v430_v61, 0.0  ;;  %v1433_v12 = vadd.f32 %v570_v1, %v1375_v11 }
 0x1f6   :  { %v434_v10 = vadd.f32 %v433_v7, %v337_v41  ;;  %v435_v3 = vpop.f32.mrb[7].mxu1  ;;  %1087 = vmatprep.subr.bf16.mxu1 %v1086_v6  ;;  %v1436_v13 = vadd.f32 %v567_v9, %v1382_v16  ;;  %v559_v23 = vsel %vm535_vm3, %v428_v57, %v547_v4 }
 0x1f7   :  { %v436_v2 = vadd.f32 %v435_v3, %v337_v41  ;;  %1089 = vmatpush3.bf16.msra.mxu1 %v1086_v6  ;;  %v560_v19 = vsel %vm536_vm2, %v430_v61, %v548_v5  ;;  %v1450_v32 = vadd.f32 %v559_v23, %v1385_v17 }
 0x1f8   :  { %vm538_vm4 = vcmp.ge.f32.partialorder %v434_v10, 0.0  ;;  %v550_v18 = vmul.f32 0.1, %v434_v10  ;;  %v1090_v21 = vpack.c.bf16 %v1433_v12, %v1436_v13  ;;  %v1444_v29 = vadd.f32 %v560_v19, %v1378_v14 }
 0x1f9   :  { %vm539_vm5 = vcmp.ge.f32.partialorder %v436_v2, 0.0  ;;  %v551_v20 = vmul.f32 0.1, %v436_v2  ;;  %v439_v22 = vpop.f32.mrb[8].mxu1 }
 0x1fa   :  { %v562_v24 = vsel %vm538_vm4, %v434_v10, %v550_v18  ;;  %v440_v11 = vadd.f32 %v439_v22, %v342_v46  ;;  %v441_v25 = vpop.f32.mrb[9].mxu1  ;;  %1091 = vmatprep.subr.bf16.mxu1 %v1090_v21 }
 0x1fb   :  { %v1441_v26 = vadd.f32 %v562_v24, %v1371_v8  ;;  %v563_v27 = vsel %vm539_vm5, %v436_v2, %v551_v20  ;;  %v442_v16 = vadd.f32 %v441_v25, %v342_v46  ;;  %1093 = vmatpush3.bf16.msra.mxu1 %v1090_v21 }
 0x1fc   :  { %v1447_v31 = vadd.f32 %v563_v27, %v1380_v15  ;;  %v553_v40 = vmul.f32 0.1, %v440_v11  ;;  %vm541_vm7 = vcmp.ge.f32.partialorder %v440_v11, 0.0 }
 0x1fd   :  { %v554_v36 = vmul.f32 0.1, %v442_v16  ;;  %v445_v37 = vpop.f32.mrb[10].mxu1  ;;  %vm542_vm6 = vcmp.ge.f32.partialorder %v442_v16, 0.0  ;;  %v1080_v15 = vpack.c.bf16 %v1441_v26, %v1450_v32 }
 0x1fe   :  { %v446_v8 = vadd.f32 %v445_v37, %v1421_v48  ;;  %v447_v41 = vpop.f32.mrb[11].mxu1  ;;  %v1078_v42 = vpack.c.bf16 %v1447_v31, %v1444_v29  ;;  %1041 = vmatmul.mubr.msk.f32.vlgmr.msra.gmra.mrb[12].mxu1 %vm98_vm0, %v584_v28  ;;  %v565_v46 = vsel %vm541_vm7, %v440_v11, %v553_v40 }
 0x1ff   :  { %v448_v14 = vadd.f32 %v447_v41, %v1421_v48  ;;  %1043 = vmatprep.mubr.msk.f32.mxu1 %vm98_vm0, %v585_v38  ;;  %v566_v44 = vsel %vm542_vm6, %v442_v16, %v554_v36  ;;  %v1471_v52 = vadd.f32 %v565_v46, %v1399_v35 }
 0x200   :  { %vm544_vm8 = vcmp.ge.f32.partialorder %v446_v8, 0.0  ;;  %v556_v17 = vmul.f32 0.1, %v446_v8  ;;  %1079 = vmatprep.subr.bf16.mxu0 %v1078_v42  ;;  %v1465_v48 = vadd.f32 %v566_v44, %v1395_v33  ;;  %v599_v33 = vpop.permute.xlu1 %598 }
 0x201   :  { %vm545_vm9 = vcmp.ge.f32.partialorder %v448_v14, 0.0  ;;  %v557_v45 = vmul.f32 0.1, %v448_v14  ;;  %1081 = vmatpush1.bf16.msra.mxu0 %v1080_v15 }
 0x202   :  { %v568_v47 = vsel %vm544_vm8, %v446_v8, %v556_v17  ;;  %1044 = vmatmul.mubr.msk.f32.gmra.mrb[14].mxu1 %vm98_vm0, %v586_v43 }
 0x203   :  { %v1461_v49 = vadd.f32 %v568_v47, %v1393_v30  ;;  %v569_v50 = vsel %vm545_vm9, %v448_v14, %v557_v45  ;;  %v594_v30 = vpop.permute.xlu0 %593 }
 0x204   :  { %v1468_v51 = vadd.f32 %v569_v50, %v1397_v34  ;;  %v1487_v55 = vpop.permute.xlu1 %608 }
 0x205   :  { %v1084_v54 = vpack.c.bf16 %v1461_v49, %v1471_v52 }
 0x206   :  { %v1082_v53 = vpack.c.bf16 %v1468_v51, %v1465_v48 }
 0x207   :  { %v1485_v34 = vpop.permute.xlu0 %603 }
 0x208   :  { %1083 = vmatprep.subr.bf16.mxu0 %v1082_v53  ;;  %v857_v9 = vpop.permute.xlu1 %856 }
 0x209   :  { %1085 = vmatpush1.bf16.msra.mxu0 %v1084_v54 }
 0x20b   :  { %v852_v4 = vpop.permute.xlu0 %851 }
 0x20c   :  { %972 = vmatmul.mubr.msk.f32.vlgmr.msra.gmra.mrb[12].mxu0 %vm98_vm0, %v1417_v39  ;;  %v1495_v27 = vpop.permute.xlu1 %866 }
 0x20d   :  { %693 = vmatprep.mubr.f32.mxu0 %v1180_v0 }
 0x210   :  { %973 = vmatmul.mubr.msk.f32.gmra.mrb[14].mxu0 %vm98_vm0, %v584_v28 }
 0x211   :  { %699 = vmatprep.mubr.f32.mxu0 %v1180_v0 }
 0x214   :  { %974 = vmatmul.mubr.msk.f32.gmra.mrb[16].mxu0 %vm98_vm0, %v585_v38 }
 0x215   :  { %705 = vmatprep.mubr.f32.mxu0 %v1180_v0 }
 0x218   :  { %975 = vmatmul.mubr.msk.f32.gmra.mrb[18].mxu0 %vm98_vm0, %v586_v43 }
 0x2d1   :  { %v1042_v35 = vpop.f32.mrb[12].mxu1 }
 0x2d2   :  { %v784_v39 = vadd.f32 %v1042_v35, %v599_v33  ;;  %v778_v56 = vpop.f32.mrb[13].mxu1 }
 0x2d3   :  { %v779_v57 = vadd.f32 %v778_v56, %v594_v30 }
 0x2d4   :  { %vm802_vm10 = vcmp.ge.f32.partialorder %v784_v39, 0.0  ;;  %v814_v58 = vmul.f32 0.1, %v784_v39 }
 0x2d5   :  { %vm799_vm11 = vcmp.ge.f32.partialorder %v779_v57, 0.0  ;;  %v811_v60 = vmul.f32 0.1, %v779_v57  ;;  %v1045_v61 = vpop.f32.mrb[14].mxu1 }
 0x2d6   :  { %v826_v63 = vsel %vm802_vm10, %v784_v39, %v814_v58  ;;  %v794_v0 = vadd.f32 %v1045_v61, %v1487_v55  ;;  %v788_v1 = vpop.f32.mrb[15].mxu1 }
 0x2d7   :  { %v838_v5 = vadd.f32 %v826_v63, %v1425_v59  ;;  %v823_v6 = vsel %vm799_vm11, %v779_v57, %v811_v60  ;;  %v789_v7 = vadd.f32 %v788_v1, %v1485_v34  ;;  %v862_v59 = vpop.permute.xlu0 %861 }
 0x2d8   :  { %v835_v10 = vadd.f32 %v823_v6, %v1428_v62  ;;  %vm808_vm0 = vcmp.ge.f32.partialorder %v794_v0, 0.0  ;;  %v820_v3 = vmul.f32 0.1, %v794_v0 }
 0x2d9   :  { %v874_v2 = vmul.f32 %v857_v9, %v838_v5  ;;  %vm805_vm12 = vcmp.ge.f32.partialorder %v789_v7, 0.0  ;;  %v817_v18 = vmul.f32 0.1, %v789_v7 }
 0x2da   :  { %v871_v19 = vmul.f32 %v852_v4, %v835_v10  ;;  %v832_v20 = vsel %vm808_vm0, %v794_v0, %v820_v3 }
 0x2db   :  { %v829_v21 = vsel %vm805_vm12, %v789_v7, %v817_v18  ;;  %v844_v23 = vadd.f32 %v832_v20, %v1433_v12 }
 0x2dc   :  { %v899_v22 = vadd.f32 %v874_v2, %v871_v19  ;;  %v841_v24 = vadd.f32 %v829_v21, %v1436_v13 }
 0x2dd   :  { %v880_v28 = vmul.f32 %v1495_v27, %v844_v23 }
 0x2de   :  { %v877_v11 = vmul.f32 %v862_v59, %v841_v24 }
 0x2df   :  { %v689_v25 = vpop.f32.mrb[12].mxu0 }
 0x2e0   :  { %v690_v16 = vadd.f32 %v689_v25, %v594_v30  ;;  %v691_v62 = vpop.f32.mrb[13].mxu0  ;;  %v900_v36 = vadd.f32 %v899_v22, %v877_v11 }
 0x2e1   :  { %v692_v37 = vadd.f32 %v691_v62, %v594_v30 }
 0x2e2   :  { %vm797_vm13 = vcmp.ge.f32.partialorder %v690_v16, 0.0  ;;  %v809_v38 = vmul.f32 0.1, %v690_v16  ;;  %v901_v40 = vadd.f32 %v900_v36, %v880_v28  ;;  %v1182_v36 = vmov 1966171168  }
 0x2e3   :  { %vm798_vm14 = vcmp.ge.f32.partialorder %v692_v37, 0.0  ;;  %v810_v8 = vmul.f32 0.1, %v692_v37  ;;  %v695_v41 = vpop.f32.mrb[14].mxu0 }
 0x2e4   :  { %v821_v12 = vsel %vm797_vm13, %v690_v16, %v809_v38  ;;  %v696_v42 = vadd.f32 %v695_v41, %v599_v33  ;;  %v697_v13 = vpop.f32.mrb[15].mxu0  ;;  %v902_v39 = vrot.slane %v901_v40, 4 }
 0x2e5   :  { %v822_v14 = vsel %vm798_vm14, %v692_v37, %v810_v8  ;;  %v698_v15 = vadd.f32 %v697_v13, %v599_v33  ;;  %v833_v43 = vadd.f32 %v821_v12, %v1450_v32  ;;  %v913_v37 = vunpack.c.l.s4 %v1182_v36 }
 0x2e6   :  { %vm800_vm15 = vcmp.ge.f32.partialorder %v696_v42, 0.0  ;;  %v812_v17 = vmul.f32 0.1, %v696_v42  ;;  %v834_v46 = vadd.f32 %v822_v14, %v1444_v29  ;;  %v903_v21 = vadd.f32 %v902_v39, %v901_v40 }
 0x2e7   :  { %vm801_vm1 = vcmp.ge.f32.partialorder %v698_v15, 0.0  ;;  %v813_v44 = vmul.f32 0.1, %v698_v15  ;;  %v701_v45 = vpop.f32.mrb[16].mxu0  ;;  %v869_v32 = vmul.f32 %v852_v4, %v833_v43  ;;  %v914_v12 = vunpack.c.0.s8 %v913_v37 }
 0x2e8   :  { %v824_v47 = vsel %vm800_vm15, %v696_v42, %v812_v17  ;;  %v702_v50 = vadd.f32 %v701_v45, %v1485_v34  ;;  %v703_v53 = vpop.f32.mrb[17].mxu0  ;;  %v870_v29 = vmul.f32 %v852_v4, %v834_v46  ;;  %v904_v24 = vrot.slane %v903_v21, 2 }
 0x2e9   :  { %v836_v54 = vadd.f32 %v824_v47, %v1441_v26  ;;  %v825_v30 = vsel %vm801_vm1, %v698_v15, %v813_v44  ;;  %v704_v35 = vadd.f32 %v703_v53, %v1485_v34 }
 0x2ea   :  { %v837_v33 = vadd.f32 %v825_v30, %v1447_v31  ;;  %vm803_vm2 = vcmp.ge.f32.partialorder %v702_v50, 0.0  ;;  %v815_v56 = vmul.f32 0.1, %v702_v50  ;;  %v905_v28 = vadd.f32 %v904_v24, %v903_v21 }
 0x2eb   :  { %v872_v57 = vmul.f32 %v857_v9, %v836_v54  ;;  %vm804_vm3 = vcmp.ge.f32.partialorder %v704_v35, 0.0  ;;  %v816_v58 = vmul.f32 0.1, %v704_v35  ;;  %v707_v60 = vpop.f32.mrb[18].mxu0 }
 0x2ec   :  { %v873_v61 = vmul.f32 %v857_v9, %v837_v33  ;;  %v827_v63 = vsel %vm803_vm2, %v702_v50, %v815_v56  ;;  %v708_v0 = vadd.f32 %v707_v60, %v1487_v55  ;;  %v709_v1 = vpop.f32.mrb[19].mxu0 }
 0x2ed   :  { %v881_v26 = vadd.f32 %v872_v57, %v869_v32  ;;  %v839_v5 = vadd.f32 %v827_v63, %v1471_v52  ;;  %v828_v34 = vsel %vm804_vm3, %v704_v35, %v816_v58  ;;  %v710_v6 = vadd.f32 %v709_v1, %v1487_v55 }
 0x2ee   :  { %v890_v31 = vadd.f32 %v873_v61, %v870_v29  ;;  %v840_v7 = vadd.f32 %v828_v34, %v1465_v48  ;;  %vm806_vm4 = vcmp.ge.f32.partialorder %v708_v0, 0.0  ;;  %v818_v10 = vmul.f32 0.1, %v708_v0 }
 0x2ef   :  { %v875_v3 = vmul.f32 %v862_v59, %v839_v5  ;;  %vm807_vm5 = vcmp.ge.f32.partialorder %v710_v6, 0.0  ;;  %v819_v2 = vmul.f32 0.1, %v710_v6 }
 0x2f0   :  { %v876_v4 = vmul.f32 %v862_v59, %v840_v7  ;;  %v830_v9 = vsel %vm806_vm4, %v708_v0, %v818_v10 }
 0x2f1   :  { %v882_v18 = vadd.f32 %v881_v26, %v875_v3  ;;  %v842_v19 = vadd.f32 %v830_v9, %v1461_v49  ;;  %v831_v20 = vsel %vm807_vm5, %v710_v6, %v819_v2  ;;  %v915_v49 = vlaneseq }
 0x2f2   :  { %v891_v22 = vadd.f32 %v890_v31, %v876_v4  ;;  %v843_v52 = vadd.f32 %v831_v20, %v1468_v51  ;;  %v906_v51 = vrot.slane %v905_v28, 1 }
 0x2f3   :  { %v878_v55 = vmul.f32 %v1495_v27, %v842_v19  ;;  %v916_v42 = vshrl.u32 %v915_v49, 7  ;;  %vm937_vm6 = vcmp.lt.s32.totalorder %v915_v49, 384 }
 0x2f4   :  { %v879_v23 = vmul.f32 %v1495_v27, %v843_v52  ;;  %v907_v17 = vadd.f32 %v906_v51, %v905_v28 }
 0x2f5   :  { %v883_v48 = vadd.f32 %v882_v18, %v878_v55  ;;  %v917_v43 = vsub.s32 %v914_v12, %v916_v42 }
 0x2f6   :  { %v892_v11 = vadd.f32 %v891_v22, %v879_v23 }
 0x2f7   :  { %v884_v25 = vrot.slane %v883_v48, 4  ;;  %v925_v46 = vrot.slane %v907_v17, %v917_v43 }
 0x2f8   :  { %v893_v16 = vrot.slane %v892_v11, 4 }
 0x2f9   :  { %v885_v62 = vadd.f32 %v884_v25, %v883_v48 }
 0x2fa   :  { %v894_v59 = vadd.f32 %v893_v16, %v892_v11 }
 0x2fb   :  { %v886_v38 = vrot.slane %v885_v62, 2 }
 0x2fc   :  { %v895_v40 = vrot.slane %v894_v59, 2 }
 0x2fd   :  { %v887_v8 = vadd.f32 %v886_v38, %v885_v62 }
 0x2fe   :  { %v896_v41 = vadd.f32 %v895_v40, %v894_v59 }
 0x2ff   :  { %v888_v13 = vrot.slane %v887_v8, 1 }
 0x300   :  { %v897_v27 = vrot.slane %v896_v41, 1 }
 0x301   :  { %v889_v14 = vadd.f32 %v888_v13, %v887_v8 }
 0x302   :  { %v898_v15 = vadd.f32 %v897_v27, %v896_v41 }
 0x304   :  { %v911_v44 = vcombine.low %v889_v14, %v898_v15 }
 0x306   :  { %v918_v45 = vrot.slane %v911_v44, %v917_v43 }
 0x308   :  { %v926_v47 = vcombine.low %v918_v45, %v925_v46 }
 0x30a   :  { %v933_v50 = vrot.slane %v926_v47, %v917_v43 }
 0x30c   :  { %939 = vst.msk [vmem:[#allocation7] sm:$0x7] %vm937_vm6, %v933_v50 }
 0x30d   :  { %1159 = shalt.err (!%p1156_p6)
}
 0x30e   :  { %s1160_s22 = scalar_lea.hbm %s1532_s8, 48 }
 0x30f   :  { %p1161_p7 = scmp.ne.s32.totalorder %s1532_s8, %s1160_s22  ;;  %p1164_p8 = scmp.lt.u32.totalorder %s1160_s22, %s1532_s8 }
 0x311   :  { %p1166_p9 = pnand %p1164_p8, %p1161_p7 }
 0x313   :  { %1169 = shalt.err (!%p1166_p9)
}
 0x314   :  { %949 = dma.vmem_to_hbm [thread:$0]  %s947_s7, 48, %s1532_s8, [#allocation4]  }
 0x315   :  { %1174 = dma.done.wait [#allocation4], 48  }
 0x316   :  { %1175 = vsyncadd [#allocation4], 4294967248 }
 0x317   :  { %953 = vsyncpa [#allocation3], 1 }
 0x318   :  { %954 = vsyncpa [#allocation6], 1 }
 0x319   :  { %955 = vsyncpa [#allocation4], 1 }

</bundles_post_ra>
